<compile_context>
chip_gen: v7x
topology: tpu7x:2x2x1
jax: 0.10.0
libtpu: 0.0.40
codegen_flags: <defaults>
</compile_context>

<pallas_src>
import functools

import jax
import jax.numpy as jnp
from jax import lax
from jax.experimental import pallas as pl
from jax.experimental.pallas import tpu as pltpu


# ----------------------------------------------------------------------------
# Pallas kernel: one sequence-chunk grid step, BOTH directions interleaved.
# ----------------------------------------------------------------------------
def _bilstm_chunk_kernel(gxf_ref, gxb_ref, whh_ref, yf_ref, yb_ref,
                         hf_scr, cf_scr, hb_scr, cb_scr,
                         *, hidden_dim, chunk, unroll):
    """
    gxf_ref : (CT, B, 4H)  gate slab (x@W_ih + b) for the FORWARD direction, chunk c.
    gxb_ref : (CT, B, 4H)  gate slab for the BACKWARD direction, chunk nc-1-c
                           (chunk order reversed by the index_map; time order forward).
    whh_ref : (2, H, 4H)   recurrent weights (transposed), fwd / bwd.  Constant block.
    yf_ref  : (CT, B, H)   forward-direction hidden outputs (forward time order).
    yb_ref  : (CT, B, H)   backward-direction hidden outputs (forward time order).
    *_scr   : (B, H) f32   per-direction h / c state, persists across the chunk axis.
    PyTorch gate order: i, f, g, o.
    """
    H = hidden_dim
    c_idx = pl.program_id(0)

    # Zero-init both directions' recurrent state at the first chunk.
    @pl.when(c_idx == 0)
    def _():
        hf_scr[...] = jnp.zeros_like(hf_scr)
        cf_scr[...] = jnp.zeros_like(cf_scr)
        hb_scr[...] = jnp.zeros_like(hb_scr)
        cb_scr[...] = jnp.zeros_like(cb_scr)

    # Weights stay VMEM-resident; loaded once per chunk, loop-invariant.
    w_f = whh_ref[0]                     # (H, 4H)
    w_b = whh_ref[1]                     # (H, 4H)
    mxu_dtype = w_f.dtype

    def cell(gates, c_prev):
        # NOTE: static slices are lane-tile aligned whenever H % 128 == 0.
        i_g = jax.nn.sigmoid(gates[:, 0 * H:1 * H])
        f_g = jax.nn.sigmoid(gates[:, 1 * H:2 * H])
        g_g = jnp.tanh(gates[:, 2 * H:3 * H])
        o_g = jax.nn.sigmoid(gates[:, 3 * H:4 * H])
        c_new = f_g * c_prev + i_g * g_g
        h_new = o_g * jnp.tanh(c_new)
        return h_new, c_new

    def step(s, carry):
        h_f, c_f, h_b, c_b = carry
        tf = s                    # forward walks 0 .. CT-1
        tb = chunk - 1 - s        # backward walks CT-1 .. 0 (reverse time)
        # Two independent recurrent dots issued back-to-back: dir-1's MXU push overlaps
        # dir-0's EUP sigmoid/tanh + VPU cell update.  f32 accumulation on the MXU.
        g_f = gxf_ref[tf].astype(jnp.float32) + jnp.dot(
            h_f.astype(mxu_dtype), w_f, preferred_element_type=jnp.float32)
        g_b = gxb_ref[tb].astype(jnp.float32) + jnp.dot(
            h_b.astype(mxu_dtype), w_b, preferred_element_type=jnp.float32)
        h_f, c_f = cell(g_f, c_f)
        h_b, c_b = cell(g_b, c_b)
        yf_ref[tf] = h_f.astype(yf_ref.dtype)
        yb_ref[tb] = h_b.astype(yb_ref.dtype)
        return (h_f, c_f, h_b, c_b)

    # Carry h/c in registers; scratch touched only at chunk boundaries.
    init = (hf_scr[...], cf_scr[...], hb_scr[...], cb_scr[...])
    h_f, c_f, h_b, c_b = lax.fori_loop(0, chunk, step, init,
                                       unroll=max(1, min(unroll, chunk)))
    hf_scr[...] = h_f
    cf_scr[...] = c_f
    hb_scr[...] = h_b
    cb_scr[...] = c_b


# ----------------------------------------------------------------------------
# VMEM-aware chunk selection (double-buffered gxf/gxb + yf/yb per chunk).
# ----------------------------------------------------------------------------
def _choose_seq_chunk(T, B, H, requested, gate_itemsize, vmem_budget=40 * 1024 * 1024):
    G = 4 * H
    chunk = max(1, min(requested, T))

    def est(ck):
        gx_bytes = 2 * 2 * ck * B * G * gate_itemsize      # gxf + gxb, double-buffered
        y_bytes = 2 * 2 * ck * B * H * 4                    # yf + yb (f32), double-buffered
        return gx_bytes + y_bytes

    while chunk > 8 and est(chunk) > vmem_budget:
        chunk = (chunk + 1) // 2
    return chunk


# ----------------------------------------------------------------------------
# Per-layer recurrence driver: one pallas_call, both directions interleaved.
# ----------------------------------------------------------------------------
def _bilstm_recurrence(gx, w_hh_stack, hidden_dim, seq_chunk, mxu_dtype, unroll):
    """
    gx         : (2, T_pad, B, 4H) precomputed input projection + bias (padded time steps
                 are exact zeros), both directions, forward time order.
    w_hh_stack : (2, 4H, H) recurrent weights (PyTorch layout) for fwd / bwd.
    returns    : (y_fwd, y_bwd), each (T_pad, B, H) f32, forward time order.
    """
    _, T_pad, B, G = gx.shape
    H = hidden_dim
    assert T_pad % seq_chunk == 0
    nc = T_pad // seq_chunk

    whh_t = jnp.transpose(w_hh_stack, (0, 2, 1)).astype(mxu_dtype)     # (2, H, 4H)

    kernel = functools.partial(
        _bilstm_chunk_kernel, hidden_dim=H, chunk=seq_chunk, unroll=unroll)

    gx_item = jnp.dtype(gx.dtype).itemsize
    whh_item = jnp.dtype(mxu_dtype).itemsize
    est = (2 * 2 * seq_chunk * B * G * gx_item        # gxf + gxb (double-buffered)
           + 2 * 2 * seq_chunk * B * H * 4            # yf + yb (double-buffered)
           + 2 * 2 * H * G * whh_item                 # W_hh (conservatively 2 bufs)
           + 4 * B * H * 4)                           # h/c scratch
    vmem_limit = min(96 * 2 ** 20, max(32 * 2 ** 20, int(est * 1.25) + (4 << 20)))

    y_f, y_b = pl.pallas_call(
        kernel,
        out_shape=(jax.ShapeDtypeStruct((T_pad, B, H), jnp.float32),
                   jax.ShapeDtypeStruct((T_pad, B, H), jnp.float32)),
        grid_spec=pltpu.PrefetchScalarGridSpec(
            num_scalar_prefetch=0,
            grid=(nc,),
            in_specs=[
                # forward gate-slab chunk: chunks visited 0 .. nc-1
                pl.BlockSpec((None, seq_chunk, B, G), lambda c: (0, c, 0, 0)),
                # backward gate-slab chunk: chunks visited nc-1 .. 0
                pl.BlockSpec((None, seq_chunk, B, G), lambda c: (1, nc - 1 - c, 0, 0)),
                # recurrent weights: constant block index -> fetched once, stays resident
                pl.BlockSpec((2, H, G), lambda c: (0, 0, 0)),
            ],
            out_specs=[
                pl.BlockSpec((seq_chunk, B, H), lambda c: (c, 0, 0)),
                pl.BlockSpec((seq_chunk, B, H), lambda c: (nc - 1 - c, 0, 0)),
            ],
            scratch_shapes=[pltpu.VMEM((B, H), jnp.float32)] * 4,       # h_f, c_f, h_b, c_b
        ),
        compiler_params=pltpu.CompilerParams(
            # The single chunk axis carries the recurrent state -> arbitrary (sequential).
            dimension_semantics=("arbitrary",),
            vmem_limit_bytes=vmem_limit,
        ),
    )(gx, gx, whh_t)
    return y_f, y_b


# ----------------------------------------------------------------------------
# BiLSTM encoder forward (stacked bidirectional LSTM, zero initial state).
# ----------------------------------------------------------------------------
@functools.partial(jax.jit, static_argnames=(
    "hidden_dim", "num_layers", "seq_chunk", "gate_dtype", "mxu_dtype", "unroll"))
def bilstm_encoder_forward(x, params, hidden_dim, num_layers, seq_chunk=64,
                           gate_dtype=jnp.bfloat16, mxu_dtype=jnp.bfloat16, unroll=4):
    """
    x: (B, T, input_dim) float32.  Returns (B, T, 2*hidden_dim), matching
    `y, _ = nn.LSTM(..., bidirectional=True, batch_first=True)(x, None)`.
    """
    H = hidden_dim
    B, T, _ = x.shape

    # Pad batch to the f32 sublane multiple; padded rows are independent and dropped.
    B_pad = ((B + 7) // 8) * 8
    if B_pad != B:
        x = jnp.pad(x, ((0, B_pad - B), (0, 0), (0, 0)))

    x_tbd = jnp.transpose(x, (1, 0, 2))                      # (T, B_pad, D) time-major
    gate_item = jnp.dtype(gate_dtype).itemsize
    chunk = _choose_seq_chunk(T, B_pad, H, seq_chunk, gate_item)
    T_pad = pl.cdiv(T, chunk) * chunk

    y_f = y_b = None
    for layer in range(num_layers):
        p = params[layer]
        wih = p["w_ih"]                                      # (2, 4H, d_in)
        bias = (p["b_ih"] + p["b_hh"])[:, None, None, :]     # (2, 1, 1, 4H)
        if layer == 0:
            # Hoisted input projection: one big MXU matmul for the whole sequence.
            gx = jnp.einsum("tbd,kgd->ktbg", x_tbd, wih,
                            preferred_element_type=jnp.float32) + bias
        else:
            # Fold the fwd/bwd concat of the previous layer into this projection:
            # concat([h_f, h_b], -1) @ W_ih.T == h_f @ W_ih[:, :H].T + h_b @ W_ih[:, H:].T
            gx = (jnp.einsum("tbh,kgh->ktbg", y_f, wih[:, :, :H],
                             preferred_element_type=jnp.float32)
                  + jnp.einsum("tbh,kgh->ktbg", y_b, wih[:, :, H:],
                               preferred_element_type=jnp.float32)
                  + bias)
        gx = gx.astype(gate_dtype)                           # bf16 slab: halves HBM + VMEM
        if T_pad != T:
            # Zero (post-bias) gate rows keep h=c=0 through the pad, so the backward
            # recurrence enters the real sequence with the correct zero state.
            gx = jnp.pad(gx, ((0, 0), (0, T_pad - T), (0, 0), (0, 0)))
        y_f, y_b = _bilstm_recurrence(gx, p["w_hh"], H, chunk, mxu_dtype, unroll)
        y_f = y_f[:T]
        y_b = y_b[:T]
        # TODO(synk): inter-layer dropout (training-mode only in PyTorch) is not applied;
        # this implements inference semantics (dropout as identity).

    y = jnp.concatenate([y_f, y_b], axis=-1)                 # (T, B_pad, 2H)
    return jnp.transpose(y, (1, 0, 2))[:B]                   # (B, T, 2H)


# ----------------------------------------------------------------------------
# Parameter init (deterministic, PyTorch-style uniform(-1/sqrt(H), 1/sqrt(H))),
# stacked per direction: index 0 = forward, 1 = backward.
# ----------------------------------------------------------------------------
def init_bilstm_params(key, input_dim, hidden_dim, num_layers):
    k = 1.0 / float(hidden_dim) ** 0.5
    params = []
    for layer in range(num_layers):
        d_in = input_dim if layer == 0 else 2 * hidden_dim
        key, k1, k2, k3, k4 = jax.random.split(key, 5)
        params.append({
            "w_ih": jax.random.uniform(k1, (2, 4 * hidden_dim, d_in), jnp.float32, -k, k),
            "w_hh": jax.random.uniform(k2, (2, 4 * hidden_dim, hidden_dim), jnp.float32, -k, k),
            "b_ih": jax.random.uniform(k3, (2, 4 * hidden_dim), jnp.float32, -k, k),
            "b_hh": jax.random.uniform(k4, (2, 4 * hidden_dim), jnp.float32, -k, k),
        })
    return params


# ----------------------------------------------------------------------------
# Pure-JAX reference (lax.scan) for correctness checking.
# ----------------------------------------------------------------------------
def _lstm_dir_ref(x_tbd, w_ih, w_hh, b, H, reverse):
    B = x_tbd.shape[1]

    def cell(carry, x_t):
        h, c = carry
        gates = x_t @ w_ih.T + h @ w_hh.T + b
        i = jax.nn.sigmoid(gates[:, 0 * H:1 * H])
        f = jax.nn.sigmoid(gates[:, 1 * H:2 * H])
        g = jnp.tanh(gates[:, 2 * H:3 * H])
        o = jax.nn.sigmoid(gates[:, 3 * H:4 * H])
        c = f * c + i * g
        h = o * jnp.tanh(c)
        return (h, c), h

    init = (jnp.zeros((B, H), jnp.float32), jnp.zeros((B, H), jnp.float32))
    _, ys = lax.scan(cell, init, x_tbd, reverse=reverse)
    return ys


def bilstm_encoder_ref(x, params, hidden_dim, num_layers):
    h = jnp.transpose(x, (1, 0, 2))
    for layer in range(num_layers):
        p = params[layer]
        b = p["b_ih"] + p["b_hh"]
        y_f = _lstm_dir_ref(h, p["w_ih"][0], p["w_hh"][0], b[0], hidden_dim, reverse=False)
        y_b = _lstm_dir_ref(h, p["w_ih"][1], p["w_hh"][1], b[1], hidden_dim, reverse=True)
        h = jnp.concatenate([y_f, y_b], axis=-1)
    return jnp.transpose(h, (1, 0, 2))


if __name__ == "__main__":
    # Small shapes consistent with the module's forward contract.
    batch_size = 2
    seq_len = 8
    input_dim = 16
    hidden_dim = 32
    num_layers = 2

    key = jax.random.PRNGKey(0)
    key, xkey = jax.random.split(key)
    x = jax.random.normal(xkey, (batch_size, seq_len, input_dim), jnp.float32)
    params = init_bilstm_params(key, input_dim, hidden_dim, num_layers)

    y_ref = jax.block_until_ready(bilstm_encoder_ref(x, params, hidden_dim, num_layers))

    # 1) Pure-f32 path (tight check of the kernel logic), chunked grid (2 chunks).
    y32 = jax.block_until_ready(
        bilstm_encoder_forward(x, params, hidden_dim, num_layers, seq_chunk=4,
                               gate_dtype=jnp.float32, mxu_dtype=jnp.float32))
    assert y32.shape == (batch_size, seq_len, 2 * hidden_dim), y32.shape
    err32 = float(jnp.max(jnp.abs(y32 - y_ref)))
    assert err32 < 1e-3, err32

    # 2) Padding paths: T % seq_chunk != 0 (time padded with zero gates) and B < 8.
    ypad = jax.block_until_ready(
        bilstm_encoder_forward(x, params, hidden_dim, num_layers, seq_chunk=3,
                               gate_dtype=jnp.float32, mxu_dtype=jnp.float32))
    errpad = float(jnp.max(jnp.abs(ypad - y_ref)))
    assert errpad < 1e-3, errpad

    # 3) Default fast path: bf16 gate slab + bf16 W_hh operands, f32 state / accumulation.
    ybf = jax.block_until_ready(
        bilstm_encoder_forward(x, params, hidden_dim, num_layers, seq_chunk=4))
    errbf = float(jnp.max(jnp.abs(ybf - y_ref)))
    assert errbf < 5e-2, errbf   # loose: intentional bf16 quantization of the gate slab

    print("KERNEL_OK")
</pallas_src>

<mosaic_0001>
module attributes {stable_mosaic.version = 11 : i64} {
  func.func @_bilstm_chunk_kernel(%arg0: i32, %arg1: memref<1x4x8x128xf32, #tpu.memory_space<vmem>>, %arg2: memref<1x4x8x128xf32, #tpu.memory_space<vmem>>, %arg3: memref<2x32x128xf32, #tpu.memory_space<vmem>>, %arg4: memref<4x8x32xf32, #tpu.memory_space<vmem>>, %arg5: memref<4x8x32xf32, #tpu.memory_space<vmem>>, %arg6: memref<8x32xf32, #tpu.memory_space<vmem>>, %arg7: memref<8x32xf32, #tpu.memory_space<vmem>>, %arg8: memref<8x32xf32, #tpu.memory_space<vmem>>, %arg9: memref<8x32xf32, #tpu.memory_space<vmem>>) attributes {dimension_semantics = [#tpu.dimension_semantics<arbitrary>], iteration_bounds = array<i64: 2>, scalar_prefetch = 0 : i64, scratch_operands = 4 : i64, tpu.core_type = #tpu.core_type<tc>, window_params = [{transform_indices = @transform_0, window_bounds = array<i64: 1, 4, 8, 128>}, {transform_indices = @transform_1, window_bounds = array<i64: 1, 4, 8, 128>}, {pipeline_mode = #tpu.pipeline_mode<synchronous>, transform_indices = @transform_2, window_bounds = array<i64: 2, 32, 128>}, {transform_indices = @transform_3, window_bounds = array<i64: 4, 8, 32>}, {transform_indices = @transform_4, window_bounds = array<i64: 4, 8, 32>}]} {
    %c0_i32 = arith.constant 0 : i32
    %0 = arith.cmpi eq, %arg0, %c0_i32 : i32
    %1 = arith.extui %0 : i1 to i32
    %c0_i32_0 = arith.constant 0 : i32
    %2 = arith.cmpi ne, %1, %c0_i32_0 : i32
    scf.if %2 {
      %cst_97 = arith.constant 0.000000e+00 : f32
      %291 = vector.broadcast %cst_97 : f32 to vector<8x32xf32>
      %c0_98 = arith.constant 0 : index
      %c0_99 = arith.constant 0 : index
      %292 = vector.load %arg6[%c0_98, %c0_99] : memref<8x32xf32, #tpu.memory_space<vmem>>, vector<8x32xf32>
      tpu.vector_store %arg6[%c0_98, %c0_99], %291 {strides = array<i32>} : memref<8x32xf32, #tpu.memory_space<vmem>>, vector<8x32xf32>,
      %cst_100 = arith.constant 0.000000e+00 : f32
      %293 = vector.broadcast %cst_100 : f32 to vector<8x32xf32>
      %c0_101 = arith.constant 0 : index
      %c0_102 = arith.constant 0 : index
      %294 = vector.load %arg7[%c0_101, %c0_102] : memref<8x32xf32, #tpu.memory_space<vmem>>, vector<8x32xf32>
      tpu.vector_store %arg7[%c0_101, %c0_102], %293 {strides = array<i32>} : memref<8x32xf32, #tpu.memory_space<vmem>>, vector<8x32xf32>,
      %cst_103 = arith.constant 0.000000e+00 : f32
      %295 = vector.broadcast %cst_103 : f32 to vector<8x32xf32>
      %c0_104 = arith.constant 0 : index
      %c0_105 = arith.constant 0 : index
      %296 = vector.load %arg8[%c0_104, %c0_105] : memref<8x32xf32, #tpu.memory_space<vmem>>, vector<8x32xf32>
      tpu.vector_store %arg8[%c0_104, %c0_105], %295 {strides = array<i32>} : memref<8x32xf32, #tpu.memory_space<vmem>>, vector<8x32xf32>,
      %cst_106 = arith.constant 0.000000e+00 : f32
      %297 = vector.broadcast %cst_106 : f32 to vector<8x32xf32>
      %c0_107 = arith.constant 0 : index
      %c0_108 = arith.constant 0 : index
      %298 = vector.load %arg9[%c0_107, %c0_108] : memref<8x32xf32, #tpu.memory_space<vmem>>, vector<8x32xf32>
      tpu.vector_store %arg9[%c0_107, %c0_108], %297 {strides = array<i32>} : memref<8x32xf32, #tpu.memory_space<vmem>>, vector<8x32xf32>,
    } else {
    }
    %c0 = arith.constant 0 : index
    %c0_1 = arith.constant 0 : index
    %c0_2 = arith.constant 0 : index
    %3 = vector.load %arg3[%c0, %c0_1, %c0_2] : memref<2x32x128xf32, #tpu.memory_space<vmem>>, vector<1x32x128xf32>
    %4 = vector.shape_cast %3 : vector<1x32x128xf32> to vector<32x128xf32>
    %c1 = arith.constant 1 : index
    %c0_3 = arith.constant 0 : index
    %c0_4 = arith.constant 0 : index
    %5 = vector.load %arg3[%c1, %c0_3, %c0_4] : memref<2x32x128xf32, #tpu.memory_space<vmem>>, vector<1x32x128xf32>
    %6 = vector.shape_cast %5 : vector<1x32x128xf32> to vector<32x128xf32>
    %c0_5 = arith.constant 0 : index
    %c0_6 = arith.constant 0 : index
    %7 = vector.load %arg6[%c0_5, %c0_6] : memref<8x32xf32, #tpu.memory_space<vmem>>, vector<8x32xf32>
    %c0_7 = arith.constant 0 : index
    %c0_8 = arith.constant 0 : index
    %8 = vector.load %arg7[%c0_7, %c0_8] : memref<8x32xf32, #tpu.memory_space<vmem>>, vector<8x32xf32>
    %c0_9 = arith.constant 0 : index
    %c0_10 = arith.constant 0 : index
    %9 = vector.load %arg8[%c0_9, %c0_10] : memref<8x32xf32, #tpu.memory_space<vmem>>, vector<8x32xf32>
    %c0_11 = arith.constant 0 : index
    %c0_12 = arith.constant 0 : index
    %10 = vector.load %arg9[%c0_11, %c0_12] : memref<8x32xf32, #tpu.memory_space<vmem>>, vector<8x32xf32>
    %c0_i32_13 = arith.constant 0 : i32
    %c3_i32 = arith.constant 3 : i32
    %11 = arith.subi %c3_i32, %c0_i32_13 : i32
    %c0_14 = arith.constant 0 : index
    %12 = arith.index_cast %c0_i32_13 : i32 to index
    %c0_15 = arith.constant 0 : index
    %c0_16 = arith.constant 0 : index
    %13 = vector.load %arg1[%c0_14, %12, %c0_15, %c0_16] : memref<1x4x8x128xf32, #tpu.memory_space<vmem>>, vector<1x1x8x128xf32>
    %14 = vector.shape_cast %13 : vector<1x1x8x128xf32> to vector<8x128xf32>
    %cst = arith.constant dense<0.000000e+00> : vector<8x128xf32>
    %15 = tpu.matmul %7, %4, %cst {dimension_numbers = #tpu.dot_dimension_numbers<[1], [0], [0], [1], [0, 0, 1, 1], [], []>} : vector<8x32xf32>, vector<32x128xf32>, vector<8x128xf32> -> vector<8x128xf32>
    %16 = arith.addf %14, %15 : vector<8x128xf32>
    %c0_17 = arith.constant 0 : index
    %17 = arith.index_cast %11 : i32 to index
    %c0_18 = arith.constant 0 : index
    %c0_19 = arith.constant 0 : index
    %18 = vector.load %arg2[%c0_17, %17, %c0_18, %c0_19] : memref<1x4x8x128xf32, #tpu.memory_space<vmem>>, vector<1x1x8x128xf32>
    %19 = vector.shape_cast %18 : vector<1x1x8x128xf32> to vector<8x128xf32>
    %cst_20 = arith.constant dense<0.000000e+00> : vector<8x128xf32>
    %20 = tpu.matmul %9, %6, %cst_20 {dimension_numbers = #tpu.dot_dimension_numbers<[1], [0], [0], [1], [0, 0, 1, 1], [], []>} : vector<8x32xf32>, vector<32x128xf32>, vector<8x128xf32> -> vector<8x128xf32>
    %21 = arith.addf %19, %20 : vector<8x128xf32>
    %22 = vector.extract_strided_slice %16 {offsets = [0, 0], sizes = [8, 32], strides = [1, 1]} : vector<8x128xf32> to vector<8x32xf32>
    %23 = arith.negf %22 : vector<8x32xf32>
    %24 = math.exp %23 : vector<8x32xf32>
    %cst_21 = arith.constant 1.000000e+00 : f32
    %25 = vector.broadcast %cst_21 : f32 to vector<8x32xf32>
    %26 = arith.addf %25, %24 : vector<8x32xf32>
    %27 = arith.divf %25, %26 : vector<8x32xf32>
    %28 = vector.extract_strided_slice %16 {offsets = [0, 32], sizes = [8, 32], strides = [1, 1]} : vector<8x128xf32> to vector<8x32xf32>
    %29 = arith.negf %28 : vector<8x32xf32>
    %30 = math.exp %29 : vector<8x32xf32>
    %cst_22 = arith.constant 1.000000e+00 : f32
    %31 = vector.broadcast %cst_22 : f32 to vector<8x32xf32>
    %32 = arith.addf %31, %30 : vector<8x32xf32>
    %33 = arith.divf %31, %32 : vector<8x32xf32>
    %34 = vector.extract_strided_slice %16 {offsets = [0, 64], sizes = [8, 32], strides = [1, 1]} : vector<8x128xf32> to vector<8x32xf32>
    %35 = math.tanh %34 : vector<8x32xf32>
    %36 = vector.extract_strided_slice %16 {offsets = [0, 96], sizes = [8, 32], strides = [1, 1]} : vector<8x128xf32> to vector<8x32xf32>
    %37 = arith.negf %36 : vector<8x32xf32>
    %38 = math.exp %37 : vector<8x32xf32>
    %cst_23 = arith.constant 1.000000e+00 : f32
    %39 = vector.broadcast %cst_23 : f32 to vector<8x32xf32>
    %40 = arith.addf %39, %38 : vector<8x32xf32>
    %41 = arith.divf %39, %40 : vector<8x32xf32>
    %42 = arith.mulf %33, %8 : vector<8x32xf32>
    %43 = arith.mulf %27, %35 : vector<8x32xf32>
    %44 = arith.addf %42, %43 : vector<8x32xf32>
    %45 = math.tanh %44 : vector<8x32xf32>
    %46 = arith.mulf %41, %45 : vector<8x32xf32>
    %47 = vector.extract_strided_slice %21 {offsets = [0, 0], sizes = [8, 32], strides = [1, 1]} : vector<8x128xf32> to vector<8x32xf32>
    %48 = arith.negf %47 : vector<8x32xf32>
    %49 = math.exp %48 : vector<8x32xf32>
    %cst_24 = arith.constant 1.000000e+00 : f32
    %50 = vector.broadcast %cst_24 : f32 to vector<8x32xf32>
    %51 = arith.addf %50, %49 : vector<8x32xf32>
    %52 = arith.divf %50, %51 : vector<8x32xf32>
    %53 = vector.extract_strided_slice %21 {offsets = [0, 32], sizes = [8, 32], strides = [1, 1]} : vector<8x128xf32> to vector<8x32xf32>
    %54 = arith.negf %53 : vector<8x32xf32>
    %55 = math.exp %54 : vector<8x32xf32>
    %cst_25 = arith.constant 1.000000e+00 : f32
    %56 = vector.broadcast %cst_25 : f32 to vector<8x32xf32>
    %57 = arith.addf %56, %55 : vector<8x32xf32>
    %58 = arith.divf %56, %57 : vector<8x32xf32>
    %59 = vector.extract_strided_slice %21 {offsets = [0, 64], sizes = [8, 32], strides = [1, 1]} : vector<8x128xf32> to vector<8x32xf32>
    %60 = math.tanh %59 : vector<8x32xf32>
    %61 = vector.extract_strided_slice %21 {offsets = [0, 96], sizes = [8, 32], strides = [1, 1]} : vector<8x128xf32> to vector<8x32xf32>
    %62 = arith.negf %61 : vector<8x32xf32>
    %63 = math.exp %62 : vector<8x32xf32>
    %cst_26 = arith.constant 1.000000e+00 : f32
    %64 = vector.broadcast %cst_26 : f32 to vector<8x32xf32>
    %65 = arith.addf %64, %63 : vector<8x32xf32>
    %66 = arith.divf %64, %65 : vector<8x32xf32>
    %67 = arith.mulf %58, %10 : vector<8x32xf32>
    %68 = arith.mulf %52, %60 : vector<8x32xf32>
    %69 = arith.addf %67, %68 : vector<8x32xf32>
    %70 = math.tanh %69 : vector<8x32xf32>
    %71 = arith.mulf %66, %70 : vector<8x32xf32>
    %72 = arith.index_cast %c0_i32_13 : i32 to index
    %c0_27 = arith.constant 0 : index
    %c0_28 = arith.constant 0 : index
    %73 = vector.load %arg4[%72, %c0_27, %c0_28] : memref<4x8x32xf32, #tpu.memory_space<vmem>>, vector<1x8x32xf32>
    %74 = vector.shape_cast %73 : vector<1x8x32xf32> to vector<8x32xf32>
    %75 = vector.shape_cast %46 : vector<8x32xf32> to vector<1x8x32xf32>
    tpu.vector_store %arg4[%72, %c0_27, %c0_28], %75 {strides = array<i32>} : memref<4x8x32xf32, #tpu.memory_space<vmem>>, vector<1x8x32xf32>,
    %76 = arith.index_cast %11 : i32 to index
    %c0_29 = arith.constant 0 : index
    %c0_30 = arith.constant 0 : index
    %77 = vector.load %arg5[%76, %c0_29, %c0_30] : memref<4x8x32xf32, #tpu.memory_space<vmem>>, vector<1x8x32xf32>
    %78 = vector.shape_cast %77 : vector<1x8x32xf32> to vector<8x32xf32>
    %79 = vector.shape_cast %71 : vector<8x32xf32> to vector<1x8x32xf32>
    tpu.vector_store %arg5[%76, %c0_29, %c0_30], %79 {strides = array<i32>} : memref<4x8x32xf32, #tpu.memory_space<vmem>>, vector<1x8x32xf32>,
    %c1_i32 = arith.constant 1 : i32
    %c3_i32_31 = arith.constant 3 : i32
    %80 = arith.subi %c3_i32_31, %c1_i32 : i32
    %c0_32 = arith.constant 0 : index
    %81 = arith.index_cast %c1_i32 : i32 to index
    %c0_33 = arith.constant 0 : index
    %c0_34 = arith.constant 0 : index
    %82 = vector.load %arg1[%c0_32, %81, %c0_33, %c0_34] : memref<1x4x8x128xf32, #tpu.memory_space<vmem>>, vector<1x1x8x128xf32>
    %83 = vector.shape_cast %82 : vector<1x1x8x128xf32> to vector<8x128xf32>
    %cst_35 = arith.constant dense<0.000000e+00> : vector<8x128xf32>
    %84 = tpu.matmul %46, %4, %cst_35 {dimension_numbers = #tpu.dot_dimension_numbers<[1], [0], [0], [1], [0, 0, 1, 1], [], []>} : vector<8x32xf32>, vector<32x128xf32>, vector<8x128xf32> -> vector<8x128xf32>
    %85 = arith.addf %83, %84 : vector<8x128xf32>
    %c0_36 = arith.constant 0 : index
    %86 = arith.index_cast %80 : i32 to index
    %c0_37 = arith.constant 0 : index
    %c0_38 = arith.constant 0 : index
    %87 = vector.load %arg2[%c0_36, %86, %c0_37, %c0_38] : memref<1x4x8x128xf32, #tpu.memory_space<vmem>>, vector<1x1x8x128xf32>
    %88 = vector.shape_cast %87 : vector<1x1x8x128xf32> to vector<8x128xf32>
    %cst_39 = arith.constant dense<0.000000e+00> : vector<8x128xf32>
    %89 = tpu.matmul %71, %6, %cst_39 {dimension_numbers = #tpu.dot_dimension_numbers<[1], [0], [0], [1], [0, 0, 1, 1], [], []>} : vector<8x32xf32>, vector<32x128xf32>, vector<8x128xf32> -> vector<8x128xf32>
    %90 = arith.addf %88, %89 : vector<8x128xf32>
    %91 = vector.extract_strided_slice %85 {offsets = [0, 0], sizes = [8, 32], strides = [1, 1]} : vector<8x128xf32> to vector<8x32xf32>
    %92 = arith.negf %91 : vector<8x32xf32>
    %93 = math.exp %92 : vector<8x32xf32>
    %cst_40 = arith.constant 1.000000e+00 : f32
    %94 = vector.broadcast %cst_40 : f32 to vector<8x32xf32>
    %95 = arith.addf %94, %93 : vector<8x32xf32>
    %96 = arith.divf %94, %95 : vector<8x32xf32>
    %97 = vector.extract_strided_slice %85 {offsets = [0, 32], sizes = [8, 32], strides = [1, 1]} : vector<8x128xf32> to vector<8x32xf32>
    %98 = arith.negf %97 : vector<8x32xf32>
    %99 = math.exp %98 : vector<8x32xf32>
    %cst_41 = arith.constant 1.000000e+00 : f32
    %100 = vector.broadcast %cst_41 : f32 to vector<8x32xf32>
    %101 = arith.addf %100, %99 : vector<8x32xf32>
    %102 = arith.divf %100, %101 : vector<8x32xf32>
    %103 = vector.extract_strided_slice %85 {offsets = [0, 64], sizes = [8, 32], strides = [1, 1]} : vector<8x128xf32> to vector<8x32xf32>
    %104 = math.tanh %103 : vector<8x32xf32>
    %105 = vector.extract_strided_slice %85 {offsets = [0, 96], sizes = [8, 32], strides = [1, 1]} : vector<8x128xf32> to vector<8x32xf32>
    %106 = arith.negf %105 : vector<8x32xf32>
    %107 = math.exp %106 : vector<8x32xf32>
    %cst_42 = arith.constant 1.000000e+00 : f32
    %108 = vector.broadcast %cst_42 : f32 to vector<8x32xf32>
    %109 = arith.addf %108, %107 : vector<8x32xf32>
    %110 = arith.divf %108, %109 : vector<8x32xf32>
    %111 = arith.mulf %102, %44 : vector<8x32xf32>
    %112 = arith.mulf %96, %104 : vector<8x32xf32>
    %113 = arith.addf %111, %112 : vector<8x32xf32>
    %114 = math.tanh %113 : vector<8x32xf32>
    %115 = arith.mulf %110, %114 : vector<8x32xf32>
    %116 = vector.extract_strided_slice %90 {offsets = [0, 0], sizes = [8, 32], strides = [1, 1]} : vector<8x128xf32> to vector<8x32xf32>
    %117 = arith.negf %116 : vector<8x32xf32>
    %118 = math.exp %117 : vector<8x32xf32>
    %cst_43 = arith.constant 1.000000e+00 : f32
    %119 = vector.broadcast %cst_43 : f32 to vector<8x32xf32>
    %120 = arith.addf %119, %118 : vector<8x32xf32>
    %121 = arith.divf %119, %120 : vector<8x32xf32>
    %122 = vector.extract_strided_slice %90 {offsets = [0, 32], sizes = [8, 32], strides = [1, 1]} : vector<8x128xf32> to vector<8x32xf32>
    %123 = arith.negf %122 : vector<8x32xf32>
    %124 = math.exp %123 : vector<8x32xf32>
    %cst_44 = arith.constant 1.000000e+00 : f32
    %125 = vector.broadcast %cst_44 : f32 to vector<8x32xf32>
    %126 = arith.addf %125, %124 : vector<8x32xf32>
    %127 = arith.divf %125, %126 : vector<8x32xf32>
    %128 = vector.extract_strided_slice %90 {offsets = [0, 64], sizes = [8, 32], strides = [1, 1]} : vector<8x128xf32> to vector<8x32xf32>
    %129 = math.tanh %128 : vector<8x32xf32>
    %130 = vector.extract_strided_slice %90 {offsets = [0, 96], sizes = [8, 32], strides = [1, 1]} : vector<8x128xf32> to vector<8x32xf32>
    %131 = arith.negf %130 : vector<8x32xf32>
    %132 = math.exp %131 : vector<8x32xf32>
    %cst_45 = arith.constant 1.000000e+00 : f32
    %133 = vector.broadcast %cst_45 : f32 to vector<8x32xf32>
    %134 = arith.addf %133, %132 : vector<8x32xf32>
    %135 = arith.divf %133, %134 : vector<8x32xf32>
    %136 = arith.mulf %127, %69 : vector<8x32xf32>
    %137 = arith.mulf %121, %129 : vector<8x32xf32>
    %138 = arith.addf %136, %137 : vector<8x32xf32>
    %139 = math.tanh %138 : vector<8x32xf32>
    %140 = arith.mulf %135, %139 : vector<8x32xf32>
    %141 = arith.index_cast %c1_i32 : i32 to index
    %c0_46 = arith.constant 0 : index
    %c0_47 = arith.constant 0 : index
    %142 = vector.load %arg4[%141, %c0_46, %c0_47] : memref<4x8x32xf32, #tpu.memory_space<vmem>>, vector<1x8x32xf32>
    %143 = vector.shape_cast %142 : vector<1x8x32xf32> to vector<8x32xf32>
    %144 = vector.shape_cast %115 : vector<8x32xf32> to vector<1x8x32xf32>
    tpu.vector_store %arg4[%141, %c0_46, %c0_47], %144 {strides = array<i32>} : memref<4x8x32xf32, #tpu.memory_space<vmem>>, vector<1x8x32xf32>,
    %145 = arith.index_cast %80 : i32 to index
    %c0_48 = arith.constant 0 : index
    %c0_49 = arith.constant 0 : index
    %146 = vector.load %arg5[%145, %c0_48, %c0_49] : memref<4x8x32xf32, #tpu.memory_space<vmem>>, vector<1x8x32xf32>
    %147 = vector.shape_cast %146 : vector<1x8x32xf32> to vector<8x32xf32>
    %148 = vector.shape_cast %140 : vector<8x32xf32> to vector<1x8x32xf32>
    tpu.vector_store %arg5[%145, %c0_48, %c0_49], %148 {strides = array<i32>} : memref<4x8x32xf32, #tpu.memory_space<vmem>>, vector<1x8x32xf32>,
    %c2_i32 = arith.constant 2 : i32
    %c3_i32_50 = arith.constant 3 : i32
    %149 = arith.subi %c3_i32_50, %c2_i32 : i32
    %c0_51 = arith.constant 0 : index
    %150 = arith.index_cast %c2_i32 : i32 to index
    %c0_52 = arith.constant 0 : index
    %c0_53 = arith.constant 0 : index
    %151 = vector.load %arg1[%c0_51, %150, %c0_52, %c0_53] : memref<1x4x8x128xf32, #tpu.memory_space<vmem>>, vector<1x1x8x128xf32>
    %152 = vector.shape_cast %151 : vector<1x1x8x128xf32> to vector<8x128xf32>
    %cst_54 = arith.constant dense<0.000000e+00> : vector<8x128xf32>
    %153 = tpu.matmul %115, %4, %cst_54 {dimension_numbers = #tpu.dot_dimension_numbers<[1], [0], [0], [1], [0, 0, 1, 1], [], []>} : vector<8x32xf32>, vector<32x128xf32>, vector<8x128xf32> -> vector<8x128xf32>
    %154 = arith.addf %152, %153 : vector<8x128xf32>
    %c0_55 = arith.constant 0 : index
    %155 = arith.index_cast %149 : i32 to index
    %c0_56 = arith.constant 0 : index
    %c0_57 = arith.constant 0 : index
    %156 = vector.load %arg2[%c0_55, %155, %c0_56, %c0_57] : memref<1x4x8x128xf32, #tpu.memory_space<vmem>>, vector<1x1x8x128xf32>
    %157 = vector.shape_cast %156 : vector<1x1x8x128xf32> to vector<8x128xf32>
    %cst_58 = arith.constant dense<0.000000e+00> : vector<8x128xf32>
    %158 = tpu.matmul %140, %6, %cst_58 {dimension_numbers = #tpu.dot_dimension_numbers<[1], [0], [0], [1], [0, 0, 1, 1], [], []>} : vector<8x32xf32>, vector<32x128xf32>, vector<8x128xf32> -> vector<8x128xf32>
    %159 = arith.addf %157, %158 : vector<8x128xf32>
    %160 = vector.extract_strided_slice %154 {offsets = [0, 0], sizes = [8, 32], strides = [1, 1]} : vector<8x128xf32> to vector<8x32xf32>
    %161 = arith.negf %160 : vector<8x32xf32>
    %162 = math.exp %161 : vector<8x32xf32>
    %cst_59 = arith.constant 1.000000e+00 : f32
    %163 = vector.broadcast %cst_59 : f32 to vector<8x32xf32>
    %164 = arith.addf %163, %162 : vector<8x32xf32>
    %165 = arith.divf %163, %164 : vector<8x32xf32>
    %166 = vector.extract_strided_slice %154 {offsets = [0, 32], sizes = [8, 32], strides = [1, 1]} : vector<8x128xf32> to vector<8x32xf32>
    %167 = arith.negf %166 : vector<8x32xf32>
    %168 = math.exp %167 : vector<8x32xf32>
    %cst_60 = arith.constant 1.000000e+00 : f32
    %169 = vector.broadcast %cst_60 : f32 to vector<8x32xf32>
    %170 = arith.addf %169, %168 : vector<8x32xf32>
    %171 = arith.divf %169, %170 : vector<8x32xf32>
    %172 = vector.extract_strided_slice %154 {offsets = [0, 64], sizes = [8, 32], strides = [1, 1]} : vector<8x128xf32> to vector<8x32xf32>
    %173 = math.tanh %172 : vector<8x32xf32>
    %174 = vector.extract_strided_slice %154 {offsets = [0, 96], sizes = [8, 32], strides = [1, 1]} : vector<8x128xf32> to vector<8x32xf32>
    %175 = arith.negf %174 : vector<8x32xf32>
    %176 = math.exp %175 : vector<8x32xf32>
    %cst_61 = arith.constant 1.000000e+00 : f32
    %177 = vector.broadcast %cst_61 : f32 to vector<8x32xf32>
    %178 = arith.addf %177, %176 : vector<8x32xf32>
    %179 = arith.divf %177, %178 : vector<8x32xf32>
    %180 = arith.mulf %171, %113 : vector<8x32xf32>
    %181 = arith.mulf %165, %173 : vector<8x32xf32>
    %182 = arith.addf %180, %181 : vector<8x32xf32>
    %183 = math.tanh %182 : vector<8x32xf32>
    %184 = arith.mulf %179, %183 : vector<8x32xf32>
    %185 = vector.extract_strided_slice %159 {offsets = [0, 0], sizes = [8, 32], strides = [1, 1]} : vector<8x128xf32> to vector<8x32xf32>
    %186 = arith.negf %185 : vector<8x32xf32>
    %187 = math.exp %186 : vector<8x32xf32>
    %cst_62 = arith.constant 1.000000e+00 : f32
    %188 = vector.broadcast %cst_62 : f32 to vector<8x32xf32>
    %189 = arith.addf %188, %187 : vector<8x32xf32>
    %190 = arith.divf %188, %189 : vector<8x32xf32>
    %191 = vector.extract_strided_slice %159 {offsets = [0, 32], sizes = [8, 32], strides = [1, 1]} : vector<8x128xf32> to vector<8x32xf32>
    %192 = arith.negf %191 : vector<8x32xf32>
    %193 = math.exp %192 : vector<8x32xf32>
    %cst_63 = arith.constant 1.000000e+00 : f32
    %194 = vector.broadcast %cst_63 : f32 to vector<8x32xf32>
    %195 = arith.addf %194, %193 : vector<8x32xf32>
    %196 = arith.divf %194, %195 : vector<8x32xf32>
    %197 = vector.extract_strided_slice %159 {offsets = [0, 64], sizes = [8, 32], strides = [1, 1]} : vector<8x128xf32> to vector<8x32xf32>
    %198 = math.tanh %197 : vector<8x32xf32>
    %199 = vector.extract_strided_slice %159 {offsets = [0, 96], sizes = [8, 32], strides = [1, 1]} : vector<8x128xf32> to vector<8x32xf32>
    %200 = arith.negf %199 : vector<8x32xf32>
    %201 = math.exp %200 : vector<8x32xf32>
    %cst_64 = arith.constant 1.000000e+00 : f32
    %202 = vector.broadcast %cst_64 : f32 to vector<8x32xf32>
    %203 = arith.addf %202, %201 : vector<8x32xf32>
    %204 = arith.divf %202, %203 : vector<8x32xf32>
    %205 = arith.mulf %196, %138 : vector<8x32xf32>
    %206 = arith.mulf %190, %198 : vector<8x32xf32>
    %207 = arith.addf %205, %206 : vector<8x32xf32>
    %208 = math.tanh %207 : vector<8x32xf32>
    %209 = arith.mulf %204, %208 : vector<8x32xf32>
    %210 = arith.index_cast %c2_i32 : i32 to index
    %c0_65 = arith.constant 0 : index
    %c0_66 = arith.constant 0 : index
    %211 = vector.load %arg4[%210, %c0_65, %c0_66] : memref<4x8x32xf32, #tpu.memory_space<vmem>>, vector<1x8x32xf32>
    %212 = vector.shape_cast %211 : vector<1x8x32xf32> to vector<8x32xf32>
    %213 = vector.shape_cast %184 : vector<8x32xf32> to vector<1x8x32xf32>
    tpu.vector_store %arg4[%210, %c0_65, %c0_66], %213 {strides = array<i32>} : memref<4x8x32xf32, #tpu.memory_space<vmem>>, vector<1x8x32xf32>,
    %214 = arith.index_cast %149 : i32 to index
    %c0_67 = arith.constant 0 : index
    %c0_68 = arith.constant 0 : index
    %215 = vector.load %arg5[%214, %c0_67, %c0_68] : memref<4x8x32xf32, #tpu.memory_space<vmem>>, vector<1x8x32xf32>
    %216 = vector.shape_cast %215 : vector<1x8x32xf32> to vector<8x32xf32>
    %217 = vector.shape_cast %209 : vector<8x32xf32> to vector<1x8x32xf32>
    tpu.vector_store %arg5[%214, %c0_67, %c0_68], %217 {strides = array<i32>} : memref<4x8x32xf32, #tpu.memory_space<vmem>>, vector<1x8x32xf32>,
    %c3_i32_69 = arith.constant 3 : i32
    %c3_i32_70 = arith.constant 3 : i32
    %218 = arith.subi %c3_i32_70, %c3_i32_69 : i32
    %c0_71 = arith.constant 0 : index
    %219 = arith.index_cast %c3_i32_69 : i32 to index
    %c0_72 = arith.constant 0 : index
    %c0_73 = arith.constant 0 : index
    %220 = vector.load %arg1[%c0_71, %219, %c0_72, %c0_73] : memref<1x4x8x128xf32, #tpu.memory_space<vmem>>, vector<1x1x8x128xf32>
    %221 = vector.shape_cast %220 : vector<1x1x8x128xf32> to vector<8x128xf32>
    %cst_74 = arith.constant dense<0.000000e+00> : vector<8x128xf32>
    %222 = tpu.matmul %184, %4, %cst_74 {dimension_numbers = #tpu.dot_dimension_numbers<[1], [0], [0], [1], [0, 0, 1, 1], [], []>} : vector<8x32xf32>, vector<32x128xf32>, vector<8x128xf32> -> vector<8x128xf32>
    %223 = arith.addf %221, %222 : vector<8x128xf32>
    %c0_75 = arith.constant 0 : index
    %224 = arith.index_cast %218 : i32 to index
    %c0_76 = arith.constant 0 : index
    %c0_77 = arith.constant 0 : index
    %225 = vector.load %arg2[%c0_75, %224, %c0_76, %c0_77] : memref<1x4x8x128xf32, #tpu.memory_space<vmem>>, vector<1x1x8x128xf32>
    %226 = vector.shape_cast %225 : vector<1x1x8x128xf32> to vector<8x128xf32>
    %cst_78 = arith.constant dense<0.000000e+00> : vector<8x128xf32>
    %227 = tpu.matmul %209, %6, %cst_78 {dimension_numbers = #tpu.dot_dimension_numbers<[1], [0], [0], [1], [0, 0, 1, 1], [], []>} : vector<8x32xf32>, vector<32x128xf32>, vector<8x128xf32> -> vector<8x128xf32>
    %228 = arith.addf %226, %227 : vector<8x128xf32>
    %229 = vector.extract_strided_slice %223 {offsets = [0, 0], sizes = [8, 32], strides = [1, 1]} : vector<8x128xf32> to vector<8x32xf32>
    %230 = arith.negf %229 : vector<8x32xf32>
    %231 = math.exp %230 : vector<8x32xf32>
    %cst_79 = arith.constant 1.000000e+00 : f32
    %232 = vector.broadcast %cst_79 : f32 to vector<8x32xf32>
    %233 = arith.addf %232, %231 : vector<8x32xf32>
    %234 = arith.divf %232, %233 : vector<8x32xf32>
    %235 = vector.extract_strided_slice %223 {offsets = [0, 32], sizes = [8, 32], strides = [1, 1]} : vector<8x128xf32> to vector<8x32xf32>
    %236 = arith.negf %235 : vector<8x32xf32>
    %237 = math.exp %236 : vector<8x32xf32>
    %cst_80 = arith.constant 1.000000e+00 : f32
    %238 = vector.broadcast %cst_80 : f32 to vector<8x32xf32>
    %239 = arith.addf %238, %237 : vector<8x32xf32>
    %240 = arith.divf %238, %239 : vector<8x32xf32>
    %241 = vector.extract_strided_slice %223 {offsets = [0, 64], sizes = [8, 32], strides = [1, 1]} : vector<8x128xf32> to vector<8x32xf32>
    %242 = math.tanh %241 : vector<8x32xf32>
    %243 = vector.extract_strided_slice %223 {offsets = [0, 96], sizes = [8, 32], strides = [1, 1]} : vector<8x128xf32> to vector<8x32xf32>
    %244 = arith.negf %243 : vector<8x32xf32>
    %245 = math.exp %244 : vector<8x32xf32>
    %cst_81 = arith.constant 1.000000e+00 : f32
    %246 = vector.broadcast %cst_81 : f32 to vector<8x32xf32>
    %247 = arith.addf %246, %245 : vector<8x32xf32>
    %248 = arith.divf %246, %247 : vector<8x32xf32>
    %249 = arith.mulf %240, %182 : vector<8x32xf32>
    %250 = arith.mulf %234, %242 : vector<8x32xf32>
    %251 = arith.addf %249, %250 : vector<8x32xf32>
    %252 = math.tanh %251 : vector<8x32xf32>
    %253 = arith.mulf %248, %252 : vector<8x32xf32>
    %254 = vector.extract_strided_slice %228 {offsets = [0, 0], sizes = [8, 32], strides = [1, 1]} : vector<8x128xf32> to vector<8x32xf32>
    %255 = arith.negf %254 : vector<8x32xf32>
    %256 = math.exp %255 : vector<8x32xf32>
    %cst_82 = arith.constant 1.000000e+00 : f32
    %257 = vector.broadcast %cst_82 : f32 to vector<8x32xf32>
    %258 = arith.addf %257, %256 : vector<8x32xf32>
    %259 = arith.divf %257, %258 : vector<8x32xf32>
    %260 = vector.extract_strided_slice %228 {offsets = [0, 32], sizes = [8, 32], strides = [1, 1]} : vector<8x128xf32> to vector<8x32xf32>
    %261 = arith.negf %260 : vector<8x32xf32>
    %262 = math.exp %261 : vector<8x32xf32>
    %cst_83 = arith.constant 1.000000e+00 : f32
    %263 = vector.broadcast %cst_83 : f32 to vector<8x32xf32>
    %264 = arith.addf %263, %262 : vector<8x32xf32>
    %265 = arith.divf %263, %264 : vector<8x32xf32>
    %266 = vector.extract_strided_slice %228 {offsets = [0, 64], sizes = [8, 32], strides = [1, 1]} : vector<8x128xf32> to vector<8x32xf32>
    %267 = math.tanh %266 : vector<8x32xf32>
    %268 = vector.extract_strided_slice %228 {offsets = [0, 96], sizes = [8, 32], strides = [1, 1]} : vector<8x128xf32> to vector<8x32xf32>
    %269 = arith.negf %268 : vector<8x32xf32>
    %270 = math.exp %269 : vector<8x32xf32>
    %cst_84 = arith.constant 1.000000e+00 : f32
    %271 = vector.broadcast %cst_84 : f32 to vector<8x32xf32>
    %272 = arith.addf %271, %270 : vector<8x32xf32>
    %273 = arith.divf %271, %272 : vector<8x32xf32>
    %274 = arith.mulf %265, %207 : vector<8x32xf32>
    %275 = arith.mulf %259, %267 : vector<8x32xf32>
    %276 = arith.addf %274, %275 : vector<8x32xf32>
    %277 = math.tanh %276 : vector<8x32xf32>
    %278 = arith.mulf %273, %277 : vector<8x32xf32>
    %279 = arith.index_cast %c3_i32_69 : i32 to index
    %c0_85 = arith.constant 0 : index
    %c0_86 = arith.constant 0 : index
    %280 = vector.load %arg4[%279, %c0_85, %c0_86] : memref<4x8x32xf32, #tpu.memory_space<vmem>>, vector<1x8x32xf32>
    %281 = vector.shape_cast %280 : vector<1x8x32xf32> to vector<8x32xf32>
    %282 = vector.shape_cast %253 : vector<8x32xf32> to vector<1x8x32xf32>
    tpu.vector_store %arg4[%279, %c0_85, %c0_86], %282 {strides = array<i32>} : memref<4x8x32xf32, #tpu.memory_space<vmem>>, vector<1x8x32xf32>,
    %283 = arith.index_cast %218 : i32 to index
    %c0_87 = arith.constant 0 : index
    %c0_88 = arith.constant 0 : index
    %284 = vector.load %arg5[%283, %c0_87, %c0_88] : memref<4x8x32xf32, #tpu.memory_space<vmem>>, vector<1x8x32xf32>
    %285 = vector.shape_cast %284 : vector<1x8x32xf32> to vector<8x32xf32>
    %286 = vector.shape_cast %278 : vector<8x32xf32> to vector<1x8x32xf32>
    tpu.vector_store %arg5[%283, %c0_87, %c0_88], %286 {strides = array<i32>} : memref<4x8x32xf32, #tpu.memory_space<vmem>>, vector<1x8x32xf32>,
    %c4_i32 = arith.constant 4 : i32
    %c0_89 = arith.constant 0 : index
    %c0_90 = arith.constant 0 : index
    %287 = vector.load %arg6[%c0_89, %c0_90] : memref<8x32xf32, #tpu.memory_space<vmem>>, vector<8x32xf32>
    tpu.vector_store %arg6[%c0_89, %c0_90], %253 {strides = array<i32>} : memref<8x32xf32, #tpu.memory_space<vmem>>, vector<8x32xf32>,
    %c0_91 = arith.constant 0 : index
    %c0_92 = arith.constant 0 : index
    %288 = vector.load %arg7[%c0_91, %c0_92] : memref<8x32xf32, #tpu.memory_space<vmem>>, vector<8x32xf32>
    tpu.vector_store %arg7[%c0_91, %c0_92], %251 {strides = array<i32>} : memref<8x32xf32, #tpu.memory_space<vmem>>, vector<8x32xf32>,
    %c0_93 = arith.constant 0 : index
    %c0_94 = arith.constant 0 : index
    %289 = vector.load %arg8[%c0_93, %c0_94] : memref<8x32xf32, #tpu.memory_space<vmem>>, vector<8x32xf32>
    tpu.vector_store %arg8[%c0_93, %c0_94], %278 {strides = array<i32>} : memref<8x32xf32, #tpu.memory_space<vmem>>, vector<8x32xf32>,
    %c0_95 = arith.constant 0 : index
    %c0_96 = arith.constant 0 : index
    %290 = vector.load %arg9[%c0_95, %c0_96] : memref<8x32xf32, #tpu.memory_space<vmem>>, vector<8x32xf32>
    tpu.vector_store %arg9[%c0_95, %c0_96], %276 {strides = array<i32>} : memref<8x32xf32, #tpu.memory_space<vmem>>, vector<8x32xf32>,
    return
  }
  func.func @transform_0(%arg0: i32) -> (i32, i32, i32, i32) {
    %c0_i32 = arith.constant 0 : i32
    %c0_i32_0 = arith.constant 0 : i32
    %c0_i32_1 = arith.constant 0 : i32
    %c0_i32_2 = arith.constant 0 : i32
    return %c0_i32, %arg0, %c0_i32_0, %c0_i32_1 : i32, i32, i32, i32
  }
  func.func @transform_1(%arg0: i32) -> (i32, i32, i32, i32) {
    %c1_i32 = arith.constant 1 : i32
    %0 = arith.subi %c1_i32, %arg0 : i32
    %c1_i32_0 = arith.constant 1 : i32
    %c0_i32 = arith.constant 0 : i32
    %c0_i32_1 = arith.constant 0 : i32
    %c0_i32_2 = arith.constant 0 : i32
    return %c1_i32_0, %0, %c0_i32, %c0_i32_1 : i32, i32, i32, i32
  }
  func.func @transform_2(%arg0: i32) -> (i32, i32, i32) {
    %c0_i32 = arith.constant 0 : i32
    %c0_i32_0 = arith.constant 0 : i32
    %c0_i32_1 = arith.constant 0 : i32
    %c0_i32_2 = arith.constant 0 : i32
    return %c0_i32, %c0_i32_0, %c0_i32_1 : i32, i32, i32
  }
  func.func @transform_3(%arg0: i32) -> (i32, i32, i32) {
    %c0_i32 = arith.constant 0 : i32
    %c0_i32_0 = arith.constant 0 : i32
    %c0_i32_1 = arith.constant 0 : i32
    return %arg0, %c0_i32, %c0_i32_0 : i32, i32, i32
  }
  func.func @transform_4(%arg0: i32) -> (i32, i32, i32) {
    %c1_i32 = arith.constant 1 : i32
    %0 = arith.subi %c1_i32, %arg0 : i32
    %c0_i32 = arith.constant 0 : i32
    %c0_i32_0 = arith.constant 0 : i32
    %c0_i32_1 = arith.constant 0 : i32
    return %0, %c0_i32, %c0_i32_0 : i32, i32, i32
  }
}

</mosaic_0001>

<bundles_post_ra>
// kernel: bilstm_encoder_forward.2
= control target key start
LH: loop header
LB: loop body
LE: loop exit
PB: predicated region body
PF: predicated region fallthrough
CT: control target
= control target key end

     0   :  { %s1588_s15 = smov 0   ;;  %s1777_s0 = inlined_call_operand.vmem [shape: f32[2,8,8,128], index: 0, kind: input, shape index: {}, may-alias: {0,1}]   ;;  %s1778_s1 = inlined_call_operand.vmem [shape: f32[2,8,8,128], index: 1, kind: input, shape index: {}, may-alias: {0,1}]   ;;  %s1779_s2 = inlined_call_operand.vmem [shape: f32[2,32,128], index: 2, kind: input, shape index: {}]   ;;  %s1780_s3 = inlined_call_operand.vmem [shape: f32[8,8,32], index: 3, kind: output, shape index: {0}]   ;;  %s1781_s4 = inlined_call_operand.vmem [shape: f32[8,8,32], index: 4, kind: output, shape index: {1}]  }
   0x1 LB: > { %s1244_s16 = sadd.s32 4294967295, %s1554_s15   ;;  %p1248_p0 = scmp.ge.s32.totalorder %s1554_s15, 1  ;;  %s1554_s15 = sphi %s1588_s15, %s15_s15  }
   0x2   : > { %p184_p1 = scmp.lt.s32.totalorder %s1554_s15, 3 }
   0x4   : > { %p185_p2 = pnand %p1248_p0, %p184_p1 }
   0x5   : > { %s1249_s17 = sshll.u32 (!%p185_p2), %s1244_s16, 2  ;;  %s229_s18 = ssub.s32 (!%p185_p2), 1, %s1244_s16 }
   0x6   : > { %188 = sbr.rel (%p185_p2) target bundleno = 2851 (0xb23), region = 32  ;;  %p224_p3 = scmp.lt.s32.totalorder (!%p185_p2), %s1249_s17, 7 }
   0x7   : > { %s1251_s19 = sshll.u32 (!%p185_p2), %s229_s18, 2  ;;  %p1257_p5 = scmp.ne.s32.totalorder (!%p185_p2), %s1244_s16, 0 }
   0x8   : > { %p231_p4 = scmp.lt.s32.totalorder (!%p185_p2), %s1251_s19, 7 }
   0xd   : > { %s1783_s17 = smov (!%p224_p3, %s1249_s17), 7  ;;  %s1785_s19 = smov (!%p231_p4, %s1251_s19), 7 }
   0xe   : > { %s1250_s20 = sshll.u32 %s1783_s17, 3  ;;  %s1252_s24 = sshll.u32 %s1785_s19, 3  ;;  %vm256_vm0 = vcmask (!%p1257_p5), 261120   ;;  %v1556_v0 = vmov (!%p1257_p5), 0.0  }
   0xf   : > { %s1599_s23 = scalar_lea.vmem %s1777_s0, %s1250_s20  ;;  %s1604_s27 = scalar_lea.vmem %s1778_s1, %s1252_s24  ;;  %257 = vst.msk [vmem:[#allocation2] sm:$0xff] (!%p1257_p5), %vm256_vm0, %v1556_v0  ;;  %258 = vst.msk [vmem:[#allocation3] sm:$0xff] (!%p1257_p5), %vm256_vm0, %v1556_v0 }
  0x10   : > { %s1609_s30 = scalar_lea.vmem %s1780_s3, %s1250_s20  ;;  %s1614_s7 = scalar_lea.vmem %s1781_s4, %s1252_s24  ;;  %259 = vst.msk [vmem:[#allocation4] sm:$0xff] (!%p1257_p5), %vm256_vm0, %v1556_v0  ;;  %260 = vst.msk [vmem:[#allocation5] sm:$0xff] (!%p1257_p5), %vm256_vm0, %v1556_v0 }
  0x11   : > { %255 = sbr.rel (%p1257_p5) target bundleno = 24 (0x18), region = 36 }
  0x18 PF: > { %v261_v1 = vld [vmem:[%s1779_s2] sm:$0xff]  ;;  %v262_v2 = vld [vmem:[%s1779_s2 + $0x8] sm:$0xff]  ;;  %v1557_v4 = vmov 0.0|0.0   ;;  %v263_v7 = vld [vmem:[%s1779_s2 + $0x10] sm:$0xff]  ;;  %vm1558_vm1 = vmmov 0   ;;  %v1559_v10 = vmov 0.0  }
  0x19   : > { %v1258_v3 = vld [vmem:[%s1779_s2 + $0x20] sm:$0xff]  ;;  %1421 = vmatprep.subr.bf16.mxu0 %v1557_v4  ;;  %v1626_v5 = vpack.c.bf16 %v262_v2, %v261_v1  ;;  %1427 = vmatprep.subr.bf16.mxu1 %v1557_v4  ;;  %v1259_v6 = vld [vmem:[%s1779_s2 + $0x28] sm:$0xff]  ;;  %v264_v8 = vld [vmem:[%s1779_s2 + $0x18] sm:$0xff]  ;;  %s1560_s26 = smov 32   ;;  %vm275_vm2 = vcmask 261120   ;;  %s1561_s28 = smov 64  }
  0x1a   : > { %v1638_v9 = vpack.c.bf16 %v1259_v6, %v1258_v3  ;;  %1341 = vmatprep.mubr.msk.f32.mxu0 %vm1558_vm1, %v1559_v10  ;;  %v1260_v11 = vld [vmem:[%s1779_s2 + $0x30] sm:$0xff]  ;;  %v1261_v12 = vld [vmem:[%s1779_s2 + $0x38] sm:$0xff]  ;;  %1352 = vmatprep.mubr.msk.f32.mxu1 %vm1558_vm1, %v1559_v10  ;;  %v1651_v13 = vpack.c.bf16 %v264_v8, %v263_v7  ;;  %v271_v14 = vld [vmem:[#allocation3] sm:$0xff] }
  0x1b   : > { %1423 = vmatpush3.bf16.msra.mxu0 %v1626_v5  ;;  %v1655_v15 = vpack.c.bf16 %v1261_v12, %v1260_v11  ;;  %434 = vrot.lane.b32.xlu1 %v271_v14, %s1560_s26  ;;  %v273_v16 = vld [vmem:[#allocation5] sm:$0xff]  ;;  %v270_v17 = vld [vmem:[#allocation2] sm:$0xff]  ;;  %v272_v18 = vld [vmem:[#allocation4] sm:$0xff] }
  0x1c   : > { %1424 = vmatprep.subr.bf16.mxu0 %v1557_v4  ;;  %1429 = vmatpush3.bf16.msra.mxu1 %v1638_v9  ;;  %v274_v19 = vld [vmem:[%s1599_s23] sm:$0xff]  ;;  %v1263_v20 = vld [vmem:[%s1604_s27 + $0x58] sm:$0xff]  ;;  %v1268_v57 = vld [vmem:[%s1599_s23 + $0x8] sm:$0xff] }
  0x1d   : > { %1430 = vmatprep.subr.bf16.mxu1 %v1557_v4  ;;  %v1270_v61 = vld [vmem:[%s1604_s27 + $0x50] sm:$0xff] }
  0x1f   : > { %1426 = vmatpush3.bf16.msra.mxu0 %v1651_v13  ;;  %462 = vrot.lane.b32.xlu1 %v273_v16, %s1560_s26 }
  0x20   : > { %1432 = vmatpush3.bf16.msra.mxu1 %v1655_v15  ;;  %1433 = vmatprep.subr.bf16.mxu0 %v1557_v4 }
  0x21   : > { %1439 = vmatprep.subr.bf16.mxu1 %v1557_v4 }
  0x22   : > { %1342 = vmatmul.mubr.msk.f32.vlgmr.msra.gmra.mrb[0].mxu0 %vm275_vm2, %v270_v17 }
  0x23   : > { %1353 = vmatmul.mubr.msk.f32.vlgmr.msra.gmra.mrb[0].mxu1 %vm275_vm2, %v272_v18  ;;  %1435 = vmatpush3.bf16.msra.mxu0 %v1626_v5 }
  0x24   : > { %1436 = vmatprep.subr.bf16.mxu0 %v1557_v4  ;;  %1441 = vmatpush3.bf16.msra.mxu1 %v1638_v9 }
  0x25   : > { %1363 = vmatprep.mubr.msk.f32.mxu0 %vm1558_vm1, %v1559_v10  ;;  %1442 = vmatprep.subr.bf16.mxu1 %v1557_v4 }
  0x26   : > { %1374 = vmatprep.mubr.msk.f32.mxu1 %vm1558_vm1, %v1559_v10 }
  0x27   : > { %1438 = vmatpush3.bf16.msra.mxu0 %v1651_v13 }
  0x28   : > { %1444 = vmatpush3.bf16.msra.mxu1 %v1655_v15  ;;  %1445 = vmatprep.subr.bf16.mxu0 %v1557_v4 }
  0x29   : > { %1451 = vmatprep.subr.bf16.mxu1 %v1557_v4 }
  0x8d   : > { %v435_v41 = vpop.permute.xlu1 %434 }
  0x91   : > { %v463_v43 = vpop.permute.xlu1 %462 }
  0xf5   : > { %v345_v21 = vpop.f32.mrb[0].mxu0 }
  0xf6   : > { %v349_v22 = vadd.f32 %v345_v21, %v274_v19  ;;  %v1343_v23 = vpop.f32.mrb[1].mxu0  ;;  %v421_v24 = vpop.f32.mrb[0].mxu1 }
  0xf7   : > { %v425_v25 = vadd.f32 %v1263_v20, %v421_v24  ;;  %v1354_v26 = vpop.f32.mrb[1].mxu1 }
  0xf8   : > { %1484 = vtanh.f32 %v349_v22  ;;  %v1265_v29 = vmul.f32 -1.442695, %v349_v22 }
  0xf9   : > { %1486 = vtanh.f32 %v425_v25  ;;  %v1266_v30 = vmul.f32 -1.442695, %v425_v25 }
  0xfa   : > { %1488 = vpow2.f32 %v1265_v29 }
  0xfb   : > { %1490 = vpow2.f32 %v1266_v30 }
 0x102   : > { %v1485_v27 = vpop.eup %1484 }
 0x103   : > { %439 = vrot.lane.b32.xlu0 %v1485_v27, %s1561_s28  ;;  %v1487_v28 = vpop.eup %1486 }
 0x104   : > { %v1489_v31 = vpop.eup %1488 }
 0x105   : > { %v429_v32 = vadd.f32 1.0, %v1489_v31  ;;  %v1491_v33 = vpop.eup %1490 }
 0x106   : > { %v457_v34 = vadd.f32 1.0, %v1491_v33 }
 0x107   : > { %467 = vrot.lane.b32.xlu0 %v1487_v28, %s1561_s28  ;;  %1492 = vrcp.f32 %v429_v32 }
 0x108   : > { %1494 = vrcp.f32 %v457_v34 }
 0x111   : > { %v1493_v35 = vpop.eup %1492 }
 0x112   : > { %v1495_v38 = vpop.eup %1494  ;;  %v437_v42 = vmul.f32 %v1493_v35, %v435_v41 }
 0x113   : > { %v465_v46 = vmul.f32 %v1495_v38, %v463_v43 }
 0x175   : > { %v440_v36 = vpop.permute.xlu0 %439 }
 0x176   : > { %v442_v37 = vmul.f32 %v1493_v35, %v440_v36 }
 0x178   : > { %444 = vrot.lane.b32.xlu0 %v442_v37, %s1560_s26 }
 0x179   : > { %v468_v39 = vpop.permute.xlu0 %467 }
 0x17a   : > { %v470_v40 = vmul.f32 %v1495_v38, %v468_v39 }
 0x17c   : > { %472 = vrot.lane.b32.xlu1 %v470_v40, %s1560_s26 }
 0x1ea   : > { %v445_v44 = vpop.permute.xlu0 %444 }
 0x1eb   : > { %v1684_v45 = vadd.f32 %v445_v44, %v437_v42 }
 0x1ed   : > { %1496 = vtanh.f32 %v1684_v45 }
 0x1ee   : > { %v473_v47 = vpop.permute.xlu1 %472 }
 0x1ef   : > { %v1687_v48 = vadd.f32 %v473_v47, %v465_v46 }
 0x1f1   : > { %1498 = vtanh.f32 %v1687_v48 }
 0x1f7   : > { %v1497_v49 = vpop.eup %1496 }
 0x1f8   : > { %450 = vrot.lane.b32.xlu0 %v1497_v49, %s1561_s28 }
 0x1fb   : > { %v1499_v50 = vpop.eup %1498 }
 0x1fc   : > { %478 = vrot.lane.b32.xlu1 %v1499_v50, %s1561_s28 }
 0x26a   : > { %v451_v51 = vpop.permute.xlu0 %450 }
 0x26b   : > { %v453_v52 = vmul.f32 %v1493_v35, %v451_v51 }
 0x26d   : > { %483 = vrot.lane.b32.xlu0 %v453_v52, %s1560_s26 }
 0x26e   : > { %v479_v53 = vpop.permute.xlu1 %478 }
 0x26f   : > { %v481_v54 = vmul.f32 %v1495_v38, %v479_v53  ;;  %v1278_v38 = vld [vmem:[%s1604_s27 + $0x48] sm:$0xff] }
 0x271   : > { %488 = vrot.lane.b32.xlu1 %v481_v54, %s1560_s26 }
 0x2df   : > { %v484_v55 = vpop.permute.xlu0 %483 }
 0x2e0   : > { %486 = vst.msk [vmem:[%s1609_s30] sm:$0xff] %vm275_vm2, %v484_v55  ;;  %1364 = vmatmul.mubr.msk.f32.vlgmr.msra.gmra.mrb[2].mxu0 %vm275_vm2, %v484_v55 }
 0x2e1   : > { %1447 = vmatpush3.bf16.msra.mxu0 %v1626_v5  ;;  %1385 = vmatprep.mubr.msk.f32.mxu0 %vm1558_vm1, %v1559_v10 }
 0x2e2   : > { %1448 = vmatprep.subr.bf16.mxu0 %v1557_v4 }
 0x2e3   : > { %v489_v56 = vpop.permute.xlu1 %488 }
 0x2e4   : > { %1267 = vst.msk [vmem:[%s1614_s7 + $0x18] sm:$0xff] %vm275_vm2, %v489_v56  ;;  %1375 = vmatmul.mubr.msk.f32.vlgmr.msra.gmra.mrb[2].mxu1 %vm275_vm2, %v489_v56 }
 0x2e5   : > { %1450 = vmatpush3.bf16.msra.mxu0 %v1651_v13  ;;  %1453 = vmatpush3.bf16.msra.mxu1 %v1638_v9 }
 0x2e6   : > { %1454 = vmatprep.subr.bf16.mxu1 %v1557_v4  ;;  %1396 = vmatprep.mubr.msk.f32.mxu1 %vm1558_vm1, %v1559_v10 }
 0x2e7   : > { %1457 = vmatprep.subr.bf16.mxu0 %v1557_v4 }
 0x2e9   : > { %1456 = vmatpush3.bf16.msra.mxu1 %v1655_v15 }
 0x2ea   : > { %1463 = vmatprep.subr.bf16.mxu1 %v1557_v4 }
 0x3b3   : > { %v563_v58 = vpop.f32.mrb[2].mxu0 }
 0x3b4   : > { %v567_v59 = vadd.f32 %v1268_v57, %v563_v58  ;;  %v1365_v60 = vpop.f32.mrb[3].mxu0 }
 0x3b6   : > { %1500 = vtanh.f32 %v567_v59  ;;  %v1272_v3 = vmul.f32 -1.442695, %v567_v59 }
 0x3b7   : > { %v638_v62 = vpop.f32.mrb[2].mxu1 }
 0x3b8   : > { %v642_v63 = vadd.f32 %v1270_v61, %v638_v62  ;;  %v1376_v0 = vpop.f32.mrb[3].mxu1 }
 0x3ba   : > { %1502 = vtanh.f32 %v642_v63  ;;  %v1273_v6 = vmul.f32 -1.442695, %v642_v63 }
 0x3bb   : > { %1504 = vpow2.f32 %v1272_v3 }
 0x3bc   : > { %1506 = vpow2.f32 %v1273_v6 }
 0x3c0   : > { %v1501_v1 = vpop.eup %1500 }
 0x3c1   : > { %652 = vrot.lane.b32.xlu0 %v1501_v1, %s1561_s28  ;;  %v1284_v1 = vld [vmem:[%s1599_s23 + $0x18] sm:$0xff] }
 0x3c4   : > { %v1503_v2 = vpop.eup %1502 }
 0x3c5   : > { %676 = vrot.lane.b32.xlu1 %v1503_v2, %s1561_s28  ;;  %v1505_v7 = vpop.eup %1504 }
 0x3c6   : > { %v646_v8 = vadd.f32 1.0, %v1505_v7  ;;  %v1507_v11 = vpop.eup %1506  ;;  %v1286_v7 = vld [vmem:[%s1604_s27 + $0x40] sm:$0xff] }
 0x3c7   : > { %v670_v12 = vadd.f32 1.0, %v1507_v11 }
 0x3c8   : > { %1508 = vrcp.f32 %v646_v8 }
 0x3c9   : > { %1510 = vrcp.f32 %v670_v12 }
 0x3d2   : > { %v1509_v14 = vpop.eup %1508 }
 0x3d3   : > { %v1511_v18 = vpop.eup %1510  ;;  %v650_v21 = vmul.f32 %v1509_v14, %v1684_v45 }
 0x3d4   : > { %v674_v24 = vmul.f32 %v1511_v18, %v1687_v48 }
 0x433   : > { %v653_v16 = vpop.permute.xlu0 %652 }
 0x434   : > { %v655_v17 = vmul.f32 %v1509_v14, %v653_v16 }
 0x436   : > { %657 = vrot.lane.b32.xlu0 %v655_v17, %s1560_s26 }
 0x437   : > { %v677_v19 = vpop.permute.xlu1 %676 }
 0x438   : > { %v679_v20 = vmul.f32 %v1511_v18, %v677_v19 }
 0x43a   : > { %681 = vrot.lane.b32.xlu1 %v679_v20, %s1560_s26 }
 0x4a8   : > { %v658_v22 = vpop.permute.xlu0 %657 }
 0x4a9   : > { %v660_v23 = vadd.f32 %v658_v22, %v650_v21 }
 0x4ab   : > { %1512 = vtanh.f32 %v660_v23 }
 0x4ac   : > { %v682_v25 = vpop.permute.xlu1 %681 }
 0x4ad   : > { %v684_v26 = vadd.f32 %v682_v25, %v674_v24 }
 0x4af   : > { %1514 = vtanh.f32 %v684_v26 }
 0x4b5   : > { %v1513_v27 = vpop.eup %1512 }
 0x4b6   : > { %663 = vrot.lane.b32.xlu0 %v1513_v27, %s1561_s28 }
 0x4b9   : > { %v1515_v28 = vpop.eup %1514 }
 0x4ba   : > { %687 = vrot.lane.b32.xlu1 %v1515_v28, %s1561_s28 }
 0x528   : > { %v664_v29 = vpop.permute.xlu0 %663 }
 0x529   : > { %v666_v30 = vmul.f32 %v1509_v14, %v664_v29 }
 0x52b   : > { %692 = vrot.lane.b32.xlu0 %v666_v30, %s1560_s26 }
 0x52c   : > { %v688_v31 = vpop.permute.xlu1 %687 }
 0x52d   : > { %v690_v32 = vmul.f32 %v1511_v18, %v688_v31 }
 0x52f   : > { %698 = vrot.lane.b32.xlu1 %v690_v32, %s1560_s26 }
 0x59d   : > { %v693_v33 = vpop.permute.xlu0 %692 }
 0x59e   : > { %1274 = vst.msk [vmem:[%s1609_s30 + $0x8] sm:$0xff] %vm275_vm2, %v693_v33  ;;  %1386 = vmatmul.mubr.msk.f32.vlgmr.msra.gmra.mrb[4].mxu0 %vm275_vm2, %v693_v33 }
 0x59f   : > { %1459 = vmatpush3.bf16.msra.mxu0 %v1626_v5  ;;  %1407 = vmatprep.mubr.msk.f32.mxu0 %vm1558_vm1, %v1559_v10  ;;  %v1276_v5 = vld [vmem:[%s1599_s23 + $0x10] sm:$0xff]  ;;  %s1562_s23 = smov 96  }
 0x5a0   : > { %1460 = vmatprep.subr.bf16.mxu0 %v1557_v4 }
 0x5a1   : > { %v699_v34 = vpop.permute.xlu1 %698 }
 0x5a2   : > { %1275 = vst.msk [vmem:[%s1614_s7 + $0x10] sm:$0xff] %vm275_vm2, %v699_v34  ;;  %1397 = vmatmul.mubr.msk.f32.vlgmr.msra.gmra.mrb[4].mxu1 %vm275_vm2, %v699_v34 }
 0x5a3   : > { %1462 = vmatpush3.bf16.msra.mxu0 %v1651_v13  ;;  %1465 = vmatpush3.bf16.msra.mxu1 %v1638_v9 }
 0x5a4   : > { %1466 = vmatprep.subr.bf16.mxu1 %v1557_v4  ;;  %1418 = vmatprep.mubr.msk.f32.mxu1 %vm1558_vm1, %v1559_v10 }
 0x5a7   : > { %1468 = vmatpush3.bf16.msra.mxu1 %v1655_v15 }
 0x671   : > { %v773_v35 = vpop.f32.mrb[4].mxu0 }
 0x672   : > { %v777_v36 = vadd.f32 %v1276_v5, %v773_v35  ;;  %v1387_v37 = vpop.f32.mrb[5].mxu0 }
 0x674   : > { %1516 = vtanh.f32 %v777_v36  ;;  %v1280_v4 = vmul.f32 -1.442695, %v777_v36 }
 0x675   : > { %v848_v39 = vpop.f32.mrb[4].mxu1 }
 0x676   : > { %v852_v40 = vadd.f32 %v1278_v38, %v848_v39  ;;  %v1398_v41 = vpop.f32.mrb[5].mxu1 }
 0x678   : > { %1518 = vtanh.f32 %v852_v40  ;;  %v1281_v10 = vmul.f32 -1.442695, %v852_v40 }
 0x679   : > { %1520 = vpow2.f32 %v1280_v4 }
 0x67a   : > { %1522 = vpow2.f32 %v1281_v10 }
 0x67e   : > { %v1517_v13 = vpop.eup %1516 }
 0x67f   : > { %862 = vrot.lane.b32.xlu0 %v1517_v13, %s1561_s28 }
 0x682   : > { %v1519_v9 = vpop.eup %1518 }
 0x683   : > { %886 = vrot.lane.b32.xlu1 %v1519_v9, %s1561_s28  ;;  %v1521_v15 = vpop.eup %1520 }
 0x684   : > { %v856_v42 = vadd.f32 1.0, %v1521_v15  ;;  %v1523_v43 = vpop.eup %1522 }
 0x685   : > { %v880_v44 = vadd.f32 1.0, %v1523_v43 }
 0x686   : > { %1524 = vrcp.f32 %v856_v42 }
 0x687   : > { %1526 = vrcp.f32 %v880_v44 }
 0x690   : > { %v1525_v45 = vpop.eup %1524 }
 0x691   : > { %v1527_v48 = vpop.eup %1526  ;;  %v860_v51 = vmul.f32 %v1525_v45, %v660_v23 }
 0x692   : > { %v884_v54 = vmul.f32 %v1527_v48, %v684_v26 }
 0x6f1   : > { %v863_v46 = vpop.permute.xlu0 %862 }
 0x6f2   : > { %v865_v47 = vmul.f32 %v1525_v45, %v863_v46 }
 0x6f4   : > { %867 = vrot.lane.b32.xlu0 %v865_v47, %s1560_s26 }
 0x6f5   : > { %v887_v49 = vpop.permute.xlu1 %886 }
 0x6f6   : > { %v889_v50 = vmul.f32 %v1527_v48, %v887_v49 }
 0x6f8   : > { %891 = vrot.lane.b32.xlu1 %v889_v50, %s1560_s26 }
 0x766   : > { %v868_v52 = vpop.permute.xlu0 %867 }
 0x767   : > { %v870_v53 = vadd.f32 %v868_v52, %v860_v51 }
 0x769   : > { %1528 = vtanh.f32 %v870_v53 }
 0x76a   : > { %v892_v55 = vpop.permute.xlu1 %891 }
 0x76b   : > { %v894_v56 = vadd.f32 %v892_v55, %v884_v54 }
 0x76d   : > { %1530 = vtanh.f32 %v894_v56 }
 0x773   : > { %v1529_v57 = vpop.eup %1528 }
 0x774   : > { %873 = vrot.lane.b32.xlu0 %v1529_v57, %s1561_s28 }
 0x777   : > { %v1531_v58 = vpop.eup %1530 }
 0x778   : > { %897 = vrot.lane.b32.xlu1 %v1531_v58, %s1561_s28 }
 0x7e6   : > { %v874_v59 = vpop.permute.xlu0 %873 }
 0x7e7   : > { %v876_v60 = vmul.f32 %v1525_v45, %v874_v59 }
 0x7e9   : > { %902 = vrot.lane.b32.xlu0 %v876_v60, %s1560_s26 }
 0x7ea   : > { %v898_v61 = vpop.permute.xlu1 %897 }
 0x7eb   : > { %v900_v62 = vmul.f32 %v1527_v48, %v898_v61 }
 0x7ed   : > { %908 = vrot.lane.b32.xlu1 %v900_v62, %s1560_s26 }
 0x85b   : > { %v903_v63 = vpop.permute.xlu0 %902 }
 0x85c   : > { %1282 = vst.msk [vmem:[%s1609_s30 + $0x10] sm:$0xff] %vm275_vm2, %v903_v63  ;;  %1408 = vmatmul.mubr.msk.f32.vlgmr.msra.gmra.mrb[6].mxu0 %vm275_vm2, %v903_v63 }
 0x85f   : > { %v909_v0 = vpop.permute.xlu1 %908 }
 0x860   : > { %1283 = vst.msk [vmem:[%s1614_s7 + $0x8] sm:$0xff] %vm275_vm2, %v909_v0  ;;  %1419 = vmatmul.mubr.msk.f32.vlgmr.msra.gmra.mrb[6].mxu1 %vm275_vm2, %v909_v0 }
 0x92f   : > { %v983_v2 = vpop.f32.mrb[6].mxu0 }
 0x930   : > { %v987_v3 = vadd.f32 %v1284_v1, %v983_v2  ;;  %v1409_v6 = vpop.f32.mrb[7].mxu0 }
 0x932   : > { %1532 = vtanh.f32 %v987_v3  ;;  %v1288_v17 = vmul.f32 -1.442695, %v987_v3 }
 0x933   : > { %v1057_v8 = vpop.f32.mrb[6].mxu1 }
 0x934   : > { %v1061_v11 = vadd.f32 %v1286_v7, %v1057_v8  ;;  %v1420_v12 = vpop.f32.mrb[7].mxu1 }
 0x936   : > { %1534 = vtanh.f32 %v1061_v11  ;;  %v1289_v18 = vmul.f32 -1.442695, %v1061_v11 }
 0x937   : > { %1536 = vpow2.f32 %v1288_v17 }
 0x938   : > { %1538 = vpow2.f32 %v1289_v18 }
 0x93c   : > { %v1533_v14 = vpop.eup %1532 }
 0x93d   : > { %1071 = vrot.lane.b32.xlu0 %v1533_v14, %s1561_s28 }
 0x940   : > { %v1535_v16 = vpop.eup %1534 }
 0x941   : > { %1095 = vrot.lane.b32.xlu1 %v1535_v16, %s1561_s28  ;;  %v1537_v19 = vpop.eup %1536 }
 0x942   : > { %v1065_v20 = vadd.f32 1.0, %v1537_v19  ;;  %v1539_v21 = vpop.eup %1538 }
 0x943   : > { %v1089_v22 = vadd.f32 1.0, %v1539_v21 }
 0x944   : > { %1540 = vrcp.f32 %v1065_v20 }
 0x945   : > { %1542 = vrcp.f32 %v1089_v22 }
 0x94e   : > { %v1541_v23 = vpop.eup %1540 }
 0x94f   : > { %v1543_v26 = vpop.eup %1542  ;;  %v1069_v29 = vmul.f32 %v1541_v23, %v870_v53 }
 0x950   : > { %v1093_v32 = vmul.f32 %v1543_v26, %v894_v56 }
 0x9af   : > { %v1072_v24 = vpop.permute.xlu0 %1071 }
 0x9b0   : > { %v1074_v25 = vmul.f32 %v1541_v23, %v1072_v24 }
 0x9b2   : > { %1076 = vrot.lane.b32.xlu0 %v1074_v25, %s1560_s26 }
 0x9b3   : > { %v1096_v27 = vpop.permute.xlu1 %1095 }
 0x9b4   : > { %v1098_v28 = vmul.f32 %v1543_v26, %v1096_v27 }
 0x9b6   : > { %1100 = vrot.lane.b32.xlu1 %v1098_v28, %s1560_s26 }
 0xa24   : > { %v1077_v30 = vpop.permute.xlu0 %1076 }
 0xa25   : > { %v1079_v31 = vadd.f32 %v1077_v30, %v1069_v29 }
 0xa27   : > { %1544 = vtanh.f32 %v1079_v31 }
 0xa28   : > { %v1101_v33 = vpop.permute.xlu1 %1100 }
 0xa29   : > { %v1103_v34 = vadd.f32 %v1101_v33, %v1093_v32 }
 0xa2b   : > { %1546 = vtanh.f32 %v1103_v34 }
 0xa31   : > { %v1545_v5 = vpop.eup %1544 }
 0xa32   : > { %1082 = vrot.lane.b32.xlu0 %v1545_v5, %s1561_s28 }
 0xa35   : > { %v1547_v35 = vpop.eup %1546 }
 0xa36   : > { %1106 = vrot.lane.b32.xlu1 %v1547_v35, %s1561_s28 }
 0xaa4   : > { %v1083_v36 = vpop.permute.xlu0 %1082 }
 0xaa5   : > { %v1085_v37 = vmul.f32 %v1541_v23, %v1083_v36 }
 0xaa7   : > { %1111 = vrot.lane.b32.xlu0 %v1085_v37, %s1560_s26 }
 0xaa8   : > { %v1107_v38 = vpop.permute.xlu1 %1106 }
 0xaa9   : > { %v1109_v39 = vmul.f32 %v1543_v26, %v1107_v38 }
 0xaab   : > { %1117 = vrot.lane.b32.xlu1 %v1109_v39, %s1560_s26  ;;  %1123 = vrot.lane.b32.xlu0 %v1079_v31, %s1562_s23 }
 0xaaf   : > { %1129 = vrot.lane.b32.xlu1 %v1103_v34, %s1562_s23 }
 0xb19   : > { %v1112_v40 = vpop.permute.xlu0 %1111 }
 0xb1a   : > { %1290 = vst.msk [vmem:[%s1609_s30 + $0x18] sm:$0xff] %vm275_vm2, %v1112_v40  ;;  %1121 = vst.msk [vmem:[#allocation2] sm:$0xff] %vm275_vm2, %v1112_v40 }
 0xb1d   : > { %v1118_v41 = vpop.permute.xlu1 %1117  ;;  %v1124_v13 = vpop.permute.xlu0 %1123 }
 0xb1e   : > { %1120 = vst.msk [vmem:[%s1614_s7] sm:$0xff] %vm275_vm2, %v1118_v41  ;;  %1127 = vst.msk [vmem:[#allocation4] sm:$0xff] %vm275_vm2, %v1118_v41 }
 0xb1f   : > { %1126 = vst.msk [vmem:[#allocation3] sm:$0xff] %vm275_vm2, %v1124_v13 }
 0xb21   : > { %v1130_v9 = vpop.permute.xlu1 %1129 }
 0xb22   : > { %1132 = vst.msk [vmem:[#allocation5] sm:$0xff] %vm275_vm2, %v1130_v9 }
 0xb23 PF: > { %s15_s15 = sadd.s32 1, %s1554_s15  }
 0xb24   : > { %p12_p6 = scmp.ge.s32.totalorder %s15_s15, 4  }
 0xb26   :  { %14 = sbr.rel (!%p12_p6) target bundleno = 1 (0x1), region = 94 }

</bundles_post_ra>
